<compile_context>
chip_gen: v7x
topology: tpu7x:2x2x1
jax: 0.10.0
libtpu: 0.0.40
codegen_flags: <defaults>
</compile_context>

<pallas_src>
import jax
import jax.numpy as jnp
from jax import lax
from jax.experimental import pallas as pl
from jax.experimental.pallas import tpu as pltpu


def _make_kernel(chunk):
    """Kernel factory; `chunk` (rows per compute chunk) is a static int."""

    def kernel(s1_ref, s2_ref, w_ref, b_ref, out_ref):
        # s1_ref : (1, TL1, Dp)       feature channels 0,1 zero-padded
        # s2_ref : (1, TL2, Dp)       feature channels 0,1 zero-padded
        # w_ref  : (Dp, Dp)           zero-padded Linear weight (y = x @ W^T + b)
        # b_ref  : (1, Dp)            zero-padded Linear bias
        # out_ref: (1, TL1, TL2, Dp)  fused [dot, bilinear, add...] channels
        f32 = jnp.float32
        tl1 = s1_ref.shape[1]

        # Hoisted once per grid step (tiny vs. the output slab).
        s2 = s2_ref[0].astype(f32)                  # [TL2, Dp]
        w = w_ref[...].astype(f32)                  # [Dp, Dp]
        b = b_ref[...].astype(f32)                  # [1, Dp]
        s2b = s2[None, :, :]                        # [1, TL2, Dp]

        @pl.loop(0, tl1 // chunk)
        def _(c):
            r0 = pl.multiple_of(c * chunk, chunk)
            s1 = s1_ref[0, pl.ds(r0, chunk), :].astype(f32)              # [CH, Dp]

            # Bilinear projection on the MXU; zero-padded rows/cols keep
            # channels 0,1 at exactly 0.
            s1b = lax.dot_general(s1, w, (((1,), (1,)), ((), ())),
                                  preferred_element_type=f32) + b        # [CH, Dp]

            # Scores computed directly in the fused-output layout (L2 on
            # sublanes, channels on lanes) via lane reduction -> [CH, TL2, 1].
            # The zero-padded channels contribute nothing to the sums.
            dotv = jnp.sum(s1[:, None, :] * s2b, axis=-1, keepdims=True)
            bilv = jnp.sum(s1b[:, None, :] * s2b, axis=-1, keepdims=True)

            # Broadcast-add slab; channels 0,1 are zero (padding) and are
            # overwritten by the score channels below.
            base = s1[:, None, :] + s2b                                   # [CH, TL2, Dp]
            ch_idx = lax.broadcasted_iota(jnp.int32, base.shape, 2)
            fused = jnp.where(ch_idx == 0, dotv,
                              jnp.where(ch_idx == 1, bilv, base))

            out_ref[0, pl.ds(r0, chunk)] = fused.astype(out_ref.dtype)

    return kernel


def _tile_candidates(n):
    """Tile sizes for a length-n axis: multiples of 8 dividing n, plus n."""
    cands = {t for t in range(8, n + 1, 8) if n % t == 0}
    cands.add(n)
    return sorted(cands)


def _pick_tiles(l1, l2, dp, itemsize,
                out_block_budget=2 * 1024 * 1024,
                chunk_row_elems=2048):
    """Choose (TL1, TL2, CH).

    TL2 is capped so one 8-sublane compute chunk (f32 slabs of 8*TL2*Dp) is
    register-friendly; TL1 then grows to fill the per-block output budget so
    the writeback DMA stays large and per-grid-step overhead (~0.35 us) is
    amortized. CH (compute-chunk rows) is the largest multiple-of-8 divisor of
    TL1 whose ~3 live f32 slabs of [CH, TL2, Dp] still fit the vreg file.
    """
    t2c = _tile_candidates(l2)
    fit2 = [t for t in t2c if t * dp <= chunk_row_elems]
    tl2 = fit2[-1] if fit2 else t2c[0]

    t1c = _tile_candidates(l1)
    fit1 = [t for t in t1c if t * tl2 * dp * itemsize <= out_block_budget]
    tl1 = fit1[-1] if fit1 else t1c[0]

    if tl1 % 8 != 0:
        ch = tl1                      # can't subdivide below sublane quantum
    else:
        ch = 8
        for c in range(8, tl1 + 1, 8):
            if tl1 % c == 0 and c * tl2 * dp <= 4 * chunk_row_elems:
                ch = c
    return tl1, tl2, ch


def combination2d(string1, string1_len, string2, string2_len, weight, bias):
    """string1: [B, L1, D], string2: [B, L2, D] -> ([B, L1, L2, D+2], string1_len)."""
    B, L1, D = string1.shape
    _, L2, _ = string2.shape
    dtype = string1.dtype
    Dp = D + 2
    itemsize = jnp.dtype(dtype).itemsize

    # Zero-pad two leading feature channels (the dot / bilinear slots) so the
    # kernel writes one fused, already-concatenated block per grid step with
    # no in-kernel lane shifting. Pads are O(B*L*D) -- tiny vs the O(B*L1*L2*D)
    # output volume.
    s1p = jnp.pad(string1, ((0, 0), (0, 0), (2, 0)))
    s2p = jnp.pad(string2, ((0, 0), (0, 0), (2, 0)))
    wp = jnp.pad(weight, ((2, 0), (2, 0)))
    bp = jnp.pad(bias, ((0, 0), (2, 0)))

    tl1, tl2, chunk = _pick_tiles(L1, L2, Dp, itemsize)
    grid = (B, L1 // tl1, L2 // tl2)

    grid_spec = pltpu.PrefetchScalarGridSpec(
        num_scalar_prefetch=0,
        grid=grid,
        in_specs=[
            pl.BlockSpec((1, tl1, Dp), lambda b, i, j: (b, i, 0)),
            pl.BlockSpec((1, tl2, Dp), lambda b, i, j: (b, j, 0)),
            pl.BlockSpec((Dp, Dp), lambda b, i, j: (0, 0)),
            pl.BlockSpec((1, Dp), lambda b, i, j: (0, 0)),
        ],
        out_specs=pl.BlockSpec((1, tl1, tl2, Dp), lambda b, i, j: (b, i, j, 0)),
    )

    out = pl.pallas_call(
        _make_kernel(chunk),
        out_shape=jax.ShapeDtypeStruct((B, L1, L2, Dp), dtype),
        grid_spec=grid_spec,
        compiler_params=pltpu.CompilerParams(
            dimension_semantics=("parallel", "parallel", "parallel"),
            vmem_limit_bytes=32 * 1024 * 1024,
        ),
    )(s1p, s2p, wp, bp)

    # TODO(synk): for small D the (D+2)-lane minor dim makes writeback DMA
    # chunks ~(D+2)*4 bytes; a lane-dense (TL1, TL2*(D+2)) store would need a
    # cross-lane relayout of the fused slab whose cost / lowering risk
    # outweighs the masked-store savings for typical D, so it is not done.

    return out, string1_len


def _reference(string1, string2, weight, bias):
    dot = jnp.einsum('bld,bmd->blm', string1, string2)
    s1b = string1 @ weight.T + bias[0]
    bil = jnp.einsum('bld,bmd->blm', s1b, string2)
    add = string1[:, :, None, :] + string2[:, None, :, :]
    return jnp.concatenate([dot[..., None], bil[..., None], add], axis=3)


if __name__ == "__main__":
    key = jax.random.PRNGKey(0)
    B, L1, L2, D = 2, 8, 8, 32

    k1, k2, k3, k4 = jax.random.split(key, 4)
    string1 = jax.random.normal(k1, (B, L1, D), dtype=jnp.float32)
    string2 = jax.random.normal(k2, (B, L2, D), dtype=jnp.float32)
    string1_len = jnp.full((B,), L1, dtype=jnp.int32)
    string2_len = jnp.full((B,), L2, dtype=jnp.int32)

    # Deterministic init of the bilinear Linear(D, D) parameters (synthetic).
    bound = 1.0 / jnp.sqrt(D)
    weight = jax.random.uniform(k3, (D, D), minval=-bound, maxval=bound,
                                dtype=jnp.float32)
    bias = jax.random.uniform(k4, (1, D), minval=-bound, maxval=bound,
                              dtype=jnp.float32)

    out, out_len = combination2d(string1, string1_len, string2, string2_len,
                                 weight, bias)
    out = jax.block_until_ready(out)

    ref = _reference(string1, string2, weight, bias)
    assert out.shape == (B, L1, L2, 2 + D), out.shape
    assert jnp.allclose(out, ref, atol=1e-4, rtol=1e-4)
    assert jnp.array_equal(out_len, string1_len)

    print("KERNEL_OK")
</pallas_src>

<mosaic_0001>
module attributes {stable_mosaic.version = 11 : i64} {
  func.func @kernel(%arg0: i32, %arg1: i32, %arg2: i32, %arg3: memref<1x8x34xf32, #tpu.memory_space<vmem>>, %arg4: memref<1x8x34xf32, #tpu.memory_space<vmem>>, %arg5: memref<34x34xf32, #tpu.memory_space<vmem>>, %arg6: memref<1x34xf32, #tpu.memory_space<vmem>>, %arg7: memref<1x8x8x34xf32, #tpu.memory_space<vmem>>) attributes {dimension_semantics = [#tpu.dimension_semantics<parallel>, #tpu.dimension_semantics<parallel>, #tpu.dimension_semantics<parallel>], iteration_bounds = array<i64: 2, 1, 1>, scalar_prefetch = 0 : i64, scratch_operands = 0 : i64, tpu.core_type = #tpu.core_type<tc>, window_params = [{transform_indices = @transform_0, window_bounds = array<i64: 1, 8, 34>}, {transform_indices = @transform_1, window_bounds = array<i64: 1, 8, 34>}, {pipeline_mode = #tpu.pipeline_mode<synchronous>, transform_indices = @transform_2, window_bounds = array<i64: 34, 34>}, {pipeline_mode = #tpu.pipeline_mode<synchronous>, transform_indices = @transform_3, window_bounds = array<i64: 1, 34>}, {transform_indices = @transform_4, window_bounds = array<i64: 1, 8, 8, 34>}]} {
    %c0 = arith.constant 0 : index
    %c0_0 = arith.constant 0 : index
    %c0_1 = arith.constant 0 : index
    %0 = vector.load %arg4[%c0, %c0_0, %c0_1] : memref<1x8x34xf32, #tpu.memory_space<vmem>>, vector<1x8x34xf32>
    %1 = vector.shape_cast %0 : vector<1x8x34xf32> to vector<8x34xf32>
    %c0_2 = arith.constant 0 : index
    %c0_3 = arith.constant 0 : index
    %2 = vector.load %arg5[%c0_2, %c0_3] : memref<34x34xf32, #tpu.memory_space<vmem>>, vector<34x34xf32>
    %c0_4 = arith.constant 0 : index
    %c0_5 = arith.constant 0 : index
    %3 = vector.load %arg6[%c0_4, %c0_5] : memref<1x34xf32, #tpu.memory_space<vmem>>, vector<1x34xf32>
    %4 = vector.shape_cast %1 : vector<8x34xf32> to vector<1x8x34xf32>
    %c0_i32 = arith.constant 0 : i32
    %c1_i32 = arith.constant 1 : i32
    %5 = arith.muli %c0_i32, %c1_i32 : i32
    %c0_i32_6 = arith.constant 0 : i32
    %6 = arith.addi %c0_i32_6, %5 : i32
    %c8_i32 = arith.constant 8 : i32
    %7 = arith.muli %6, %c8_i32 : i32
    %8 = tpu.assume_multiple %7, 8 : i32
    %c0_7 = arith.constant 0 : index
    %9 = arith.index_cast %8 : i32 to index
    %c0_8 = arith.constant 0 : index
    %10 = vector.load %arg3[%c0_7, %9, %c0_8] : memref<1x8x34xf32, #tpu.memory_space<vmem>>, vector<1x8x34xf32>
    %11 = vector.shape_cast %10 : vector<1x8x34xf32> to vector<8x34xf32>
    %cst = arith.constant dense<0.000000e+00> : vector<8x34xf32>
    %12 = tpu.matmul %11, %2, %cst {dimension_numbers = #tpu.dot_dimension_numbers<[1], [1], [0], [0], [0, 0, 1, 0], [], []>} : vector<8x34xf32>, vector<34x34xf32>, vector<8x34xf32> -> vector<8x34xf32>
    %13 = vector.broadcast %3 : vector<1x34xf32> to vector<8x34xf32>
    %14 = arith.addf %12, %13 : vector<8x34xf32>
    %15 = vector.shape_cast %11 : vector<8x34xf32> to vector<8x1x34xf32>
    %16 = vector.broadcast %15 : vector<8x1x34xf32> to vector<8x8x34xf32>
    %17 = vector.broadcast %4 : vector<1x8x34xf32> to vector<8x8x34xf32>
    %18 = arith.mulf %16, %17 : vector<8x8x34xf32>
    %cst_9 = arith.constant dense<0.000000e+00> : vector<8x8xf32>
    %19 = vector.multi_reduction <add>, %18, %cst_9 [2] : vector<8x8x34xf32> to vector<8x8xf32>
    %20 = vector.shape_cast %19 : vector<8x8xf32> to vector<8x8x1xf32>
    %21 = vector.shape_cast %14 : vector<8x34xf32> to vector<8x1x34xf32>
    %22 = vector.broadcast %21 : vector<8x1x34xf32> to vector<8x8x34xf32>
    %23 = vector.broadcast %4 : vector<1x8x34xf32> to vector<8x8x34xf32>
    %24 = arith.mulf %22, %23 : vector<8x8x34xf32>
    %cst_10 = arith.constant dense<0.000000e+00> : vector<8x8xf32>
    %25 = vector.multi_reduction <add>, %24, %cst_10 [2] : vector<8x8x34xf32> to vector<8x8xf32>
    %26 = vector.shape_cast %25 : vector<8x8xf32> to vector<8x8x1xf32>
    %27 = vector.shape_cast %11 : vector<8x34xf32> to vector<8x1x34xf32>
    %28 = vector.broadcast %27 : vector<8x1x34xf32> to vector<8x8x34xf32>
    %29 = vector.broadcast %4 : vector<1x8x34xf32> to vector<8x8x34xf32>
    %30 = arith.addf %28, %29 : vector<8x8x34xf32>
    %31 = tpu.iota {dimensions = array<i32: 2>} : vector<8x8x34xi32>
    %c0_i32_11 = arith.constant 0 : i32
    %32 = vector.broadcast %c0_i32_11 : i32 to vector<8x8x34xi32>
    %33 = arith.cmpi eq, %31, %32 : vector<8x8x34xi32>
    %c1_i32_12 = arith.constant 1 : i32
    %34 = vector.broadcast %c1_i32_12 : i32 to vector<8x8x34xi32>
    %35 = arith.cmpi eq, %31, %34 : vector<8x8x34xi32>
    %36 = vector.shape_cast %26 : vector<8x8x1xf32> to vector<8x8x1xf32>
    %37 = vector.broadcast %36 : vector<8x8x1xf32> to vector<8x8x34xf32>
    %38 = arith.select %35, %37, %30 : vector<8x8x34xi1>, vector<8x8x34xf32>
    %39 = vector.shape_cast %20 : vector<8x8x1xf32> to vector<8x8x1xf32>
    %40 = vector.broadcast %39 : vector<8x8x1xf32> to vector<8x8x34xf32>
    %41 = arith.select %33, %40, %38 : vector<8x8x34xi1>, vector<8x8x34xf32>
    %c0_13 = arith.constant 0 : index
    %42 = arith.index_cast %8 : i32 to index
    %c0_14 = arith.constant 0 : index
    %c0_15 = arith.constant 0 : index
    %43 = vector.load %arg7[%c0_13, %42, %c0_14, %c0_15] : memref<1x8x8x34xf32, #tpu.memory_space<vmem>>, vector<1x8x8x34xf32>
    %44 = vector.shape_cast %43 : vector<1x8x8x34xf32> to vector<8x8x34xf32>
    %45 = vector.shape_cast %41 : vector<8x8x34xf32> to vector<1x8x8x34xf32>
    tpu.vector_store %arg7[%c0_13, %42, %c0_14, %c0_15], %45 {strides = array<i32>} : memref<1x8x8x34xf32, #tpu.memory_space<vmem>>, vector<1x8x8x34xf32>,
    %c1_i32_16 = arith.constant 1 : i32
    return
  }
  func.func @transform_0(%arg0: i32, %arg1: i32, %arg2: i32) -> (i32, i32, i32) {
    %c0_i32 = arith.constant 0 : i32
    %c0_i32_0 = arith.constant 0 : i32
    return %arg0, %arg1, %c0_i32 : i32, i32, i32
  }
  func.func @transform_1(%arg0: i32, %arg1: i32, %arg2: i32) -> (i32, i32, i32) {
    %c0_i32 = arith.constant 0 : i32
    %c0_i32_0 = arith.constant 0 : i32
    return %arg0, %arg2, %c0_i32 : i32, i32, i32
  }
  func.func @transform_2(%arg0: i32, %arg1: i32, %arg2: i32) -> (i32, i32) {
    %c0_i32 = arith.constant 0 : i32
    %c0_i32_0 = arith.constant 0 : i32
    %c0_i32_1 = arith.constant 0 : i32
    return %c0_i32, %c0_i32_0 : i32, i32
  }
  func.func @transform_3(%arg0: i32, %arg1: i32, %arg2: i32) -> (i32, i32) {
    %c0_i32 = arith.constant 0 : i32
    %c0_i32_0 = arith.constant 0 : i32
    %c0_i32_1 = arith.constant 0 : i32
    return %c0_i32, %c0_i32_0 : i32, i32
  }
  func.func @transform_4(%arg0: i32, %arg1: i32, %arg2: i32) -> (i32, i32, i32, i32) {
    %c0_i32 = arith.constant 0 : i32
    %c0_i32_0 = arith.constant 0 : i32
    return %arg0, %arg1, %arg2, %c0_i32 : i32, i32, i32, i32
  }
}

</mosaic_0001>

<bundles_post_ra>
// kernel: tpu_custom_call.1
= control target key start
LH: loop header
LB: loop body
LE: loop exit
PB: predicated region body
PF: predicated region fallthrough
CT: control target
= control target key end

     0   :  { %s1555_s0 = inlined_call_operand.hbm [shape: f32[2,8,34], index: 0, kind: input, shape index: {}]   ;;  %s1556_s1 = inlined_call_operand.hbm [shape: f32[2,8,34], index: 1, kind: input, shape index: {}]   ;;  %s1557_s2 = inlined_call_operand.hbm [shape: f32[34,34], index: 2, kind: input, shape index: {}]   ;;  %s1558_s3 = inlined_call_operand.vmem [shape: f32[1,34], index: 3, kind: input, shape index: {}]   ;;  %s1559_s4 = inlined_call_operand.hbm [shape: f32[2,8,8,34], index: 4, kind: output, shape index: {}]  }
   0x1   :  { %1566 = sst [smem:[#allocation15_spill]] %s1557_s2 }
   0x2   :  { %9 = vsyncpa [#allocation3], 0 }
   0x3   :  { %11 = vsyncpa [#allocation3 + $0x1], 0 }
   0x4   :  { %12 = vsyncpa [#allocation6], 0 }
   0x5   :  { %14 = vsyncpa [#allocation6 + $0x1], 0 }
   0x6   :  { %15 = vsyncpa [#allocation4], 0 }
   0x7   :  { %17 = vsyncpa [#allocation4 + $0x1], 0  ;;  %s1175_s15 = smov 0   ;;  %s1177_s16 = smov 0  }
   0x8   :  { %s1179_s17 = smov 0   ;;  %s1181_s18 = smov 0  }
   0x9   :  { %s1183_s19 = smov 0   ;;  %s1185_s20 = smov 0  }
   0xa LB: > { %1567 = sst [smem:[#allocation13_spill]] %s1132_s19  ;;  %s1206_s21 = sadd.s32 4294967295, %s1136_s20   ;;  %s1136_s20 = sphi %s1185_s20, %s23_s20   ;;  %s1132_s19 = sphi %s1183_s19, %s1586_s19   ;;  %s1128_s18 = sphi %s1181_s18, %s1585_s18   ;;  %s1124_s17 = sphi %s1179_s17, %s1589_s17   ;;  %s1120_s16 = sphi %s1177_s16, %s1588_s16   ;;  %s1116_s15 = sphi %s1175_s15, %s1587_s15  }
   0xb   : > { %s818_s22 = sadd.s32 4294967294, %s1136_s20   ;;  %p64_p0 = scmp.ne.s32.totalorder %s1120_s16, %s1116_s15 }
   0xc   : > { %p1560_p1 = scmp.eq.s32.totalorder %s1206_s21, 0  ;;  %p168_p3 = scmp.eq.s32.totalorder %s818_s22, 1 }
   0xd   : > { %p819_p5 = scmp.ge.s32.totalorder %s1136_s20, 1  ;;  %p175_p7 = scmp.lt.s32.totalorder %s1136_s20, 3 }
   0xe   : > { %p1215_p4 = por %p1560_p1, %p64_p0  ;;  %p1220_p6 = por %p168_p3, %p64_p0 }
   0xf   : > { %p1225_p8 = pnand %p819_p5, %p175_p7  ;;  %s1138_s26 = smov [#allocation7]  }
  0x10   : > { %s1568_s23 = scalar_select %p1215_p4, 1, 0 }
  0x11   : > { %s1569_s24 = scalar_select %p1220_p6, 1, 0 }
  0x12   : > { %s1570_s25 = scalar_select %p1225_p8, 1, 0 }
  0x13   : > { %s187_s27 = sshll.u32 %s1138_s26, 4  ;;  %p881_p9 = pneg %p1225_p8  ;;  %s188_s27 = int_to_ptr.vmem [resolvable:$true] %s187_s27 }
  0x14   : > { %s42_s29 = sadd.s32 1, %s1132_s19  ;;  %s1572_s2 = sld [smem:[#allocation15_spill]] }
  0x15   : > { %p1234_p11 = pnand %p881_p9, %p1560_p1 }
  0x17   : > { %p960_p13 = pneg %p1234_p11 }
  0x1a   : > { %s958_s6 = scalar_lea.hbm %s1572_s2, 640 }
  0x1b   : > { %p959_p12 = scmp.ne.s32.totalorder %s1572_s2, %s958_s6  ;;  %p965_p5 = scmp.lt.u32.totalorder %s958_s6, %s1572_s2 }
  0x1d   : > { %p961_p0 = pnand %p960_p13, %p959_p12 }
  0x1f   : > { %p962_p3 = pneg %p961_p0 }
  0x21   : > { %p967_p7 = pnand %p965_p5, %p962_p3 }
  0x23   : > { %970 = shalt.err (!%p967_p7)
}
  0x24   : > { %s971_s11 = scalar_lea.vmem %s188_s27, 640  ;;  %p979_p2 = scmp.lt.s32.totalorder %s188_s27, %s188_s27 }
  0x25   : > { %p972_p9 = scmp.ne.s32.totalorder %s188_s27, %s971_s11  ;;  %p980_p6 = scmp.lt.s32.totalorder %s971_s11, %s971_s11 }
  0x27   : > { %p974_p10 = pnand %p972_p9, %p960_p13  ;;  %p981_p4 = por %p980_p6, %p979_p2 }
  0x29   : > { %p975_p1 = pneg %p974_p10 }
  0x2b   : > { %p982_p8 = pnand %p981_p4, %p975_p1 }
  0x2d   : > { %985 = shalt.err (!%p982_p8)
}
  0x2e   : > { %s1139_s12 = smov 128   ;;  %s1140_s13 = smov 8  }
  0x2f   : > { %884 = dma.hbm_to_vmem [thread:$0]  (!%p1234_p11), %s1572_s2, 640, %s188_s27, [#allocation6], %s1139_s12, %s1139_s12, %s1140_s13  }
  0x30   : > { %p44_p1 = scmp.ge.s32.totalorder %s42_s29, 2  ;;  %s51_s26 = sadd.s32 1, %s1124_s17 }
  0x31   : > { %p58_p2 = scmp.ne.s32.totalorder %s1124_s17, %s1120_s16  ;;  %p59_p4 = scmp.eq.s32.totalorder %s1136_s20, 0 }
  0x32   : > { %s1591_s29 = smov (%p44_p1, %s42_s29), 0  ;;  %p1575_p8 = scmp.eq.s32.totalorder %s1206_s21, 1 }
  0x33   : > { %1573 = sst [smem:[#allocation14_spill]] %s1591_s29  ;;  %p1261_p6 = por %p59_p4, %p58_p2 }
  0x34   : > { %p1267_p10 = por %p1575_p8, %p58_p2  ;;  %s46_s5 = ssub.s32 %s1132_s19, %s1591_s29 }
  0x35   : > { %p897_p11 = scmp.lt.s32.totalorder %s1136_s20, 2  ;;  %p49_p12 = scmp.eq.s32.totalorder %s46_s5, 0 }
  0x36   : > { %s1576_s28 = scalar_select %p1267_p10, 1, 0 }
  0x37   : > { %s204_s27 = sand.u32 1, %s1124_s17   ;;  %s823_s8 = sshll.u32 %s1132_s19, 7 }
  0x38   : > { %s1275_s6 = sshll.u32 %s204_s27, 3  ;;  %s1284_s11 = scalar_lea.hbm %s1555_s0, %s823_s8 }
  0x39   : > { %s1278_s7 = scalar_select %p49_p12, %s1124_s17, %s51_s26  }
  0x3a   : > { %s208_s12 = scalar_lea.vmem [#allocation2], %s1275_s6  ;;  %p1291_p13 = pnand %p897_p11, %p1261_p6 }
  0x3b   : > { %s216_s13 = sshll.u32 %s208_s12, 4  ;;  %s1298_s5 = scalar_lea.hbm %s1556_s1, %s823_s8  ;;  %s1287_s13 = int_to_ptr.vmem [resolvable:$true] %s216_s13 }
  0x3c   : > { %s223_s9 = sand.u32 1, %s1136_s20   ;;  %s205_s10 = scalar_lea.sflag [#allocation3], %s204_s27 }
  0x3d   : > { %s986_s2 = scalar_lea.hbm %s1284_s11, 128  ;;  %p988_p3 = pneg %p1291_p13 }
  0x3e   : > { %p987_p0 = scmp.ne.s32.totalorder %s1284_s11, %s986_s2  ;;  %s991_s29 = scalar_lea.hbm %s1555_s0, 256 }
  0x3f   : > { %p992_p9 = scmp.lt.u32.totalorder %s1284_s11, %s1555_s0  ;;  %p993_p1 = scmp.lt.u32.totalorder %s991_s29, %s986_s2 }
  0x40   : > { %p989_p5 = pnand %p988_p3, %p987_p0  ;;  %p995_p4 = scmp.lt.u32.totalorder %s986_s2, %s1284_s11 }
  0x41   : > { %p994_p2 = por %p993_p1, %p992_p9 }
  0x42   : > { %p990_p7 = pneg %p989_p5 }
  0x43   : > { %p996_p6 = por %p995_p4, %p994_p2 }
  0x45   : > { %p997_p8 = pnand %p996_p6, %p990_p7 }
  0x47   : > { %1000 = shalt.err (!%p997_p8)
}
  0x48   : > { %s1001_s27 = scalar_lea.vmem %s1287_s13, 128  ;;  %s1141_s8 = smov [#allocation2]  }
  0x49   : > { %p1002_p11 = scmp.ne.s32.totalorder %s1287_s13, %s1001_s27  ;;  %s1006_s26 = sshll.u32 %s1141_s8, 4  ;;  %s1007_s26 = int_to_ptr.vmem [resolvable:$false] %s1006_s26 }
  0x4a   : > { %s1008_s19 = scalar_lea.vmem %s1007_s26, 256  ;;  %p1009_p5 = scmp.lt.s32.totalorder %s1287_s13, %s1007_s26 }
  0x4b   : > { %p1004_p12 = pnand %p1002_p11, %p988_p3  ;;  %p1010_p9 = scmp.lt.s32.totalorder %s1008_s19, %s1001_s27 }
  0x4d   : > { %p1005_p0 = pneg %p1004_p12  ;;  %p1011_p1 = por %p1010_p9, %p1009_p5 }
  0x4f   : > { %p1012_p2 = pnand %p1011_p1, %p1005_p0 }
  0x51   : > { %1015 = shalt.err (!%p1012_p2)
}
  0x52   : > { %888 = dma.hbm_to_vmem [thread:$0]  (!%p1291_p13), %s1284_s11, 128, %s1287_s13, %s205_s10  }
  0x53   : > { %s227_s2 = scalar_lea.vmem [#allocation5], %s1275_s6  ;;  %s224_s30 = scalar_lea.sflag [#allocation6], %s223_s9 }
  0x54   : > { %s235_s29 = sshll.u32 %s227_s2, 4  ;;  %s1016_s12 = scalar_lea.hbm %s1298_s5, 128  ;;  %s236_s29 = int_to_ptr.vmem [resolvable:$true] %s235_s29 }
  0x55   : > { %p1017_p7 = scmp.ne.s32.totalorder %s1298_s5, %s1016_s12  ;;  %s1021_s8 = scalar_lea.hbm %s1556_s1, 256 }
  0x56   : > { %p1022_p8 = scmp.lt.u32.totalorder %s1298_s5, %s1556_s1  ;;  %p1023_p11 = scmp.lt.u32.totalorder %s1021_s8, %s1016_s12 }
  0x57   : > { %p1019_p4 = pnand %p1017_p7, %p988_p3  ;;  %p1025_p0 = scmp.lt.u32.totalorder %s1016_s12, %s1298_s5 }
  0x58   : > { %p1024_p12 = por %p1023_p11, %p1022_p8 }
  0x59   : > { %p1020_p6 = pneg %p1019_p4 }
  0x5a   : > { %p1026_p5 = por %p1025_p0, %p1024_p12 }
  0x5c   : > { %p1027_p9 = pnand %p1026_p5, %p1020_p6 }
  0x5e   : > { %1030 = shalt.err (!%p1027_p9)
}
  0x5f   : > { %s1031_s6 = scalar_lea.vmem %s236_s29, 128  ;;  %s1142_s11 = smov [#allocation5]  }
  0x60   : > { %p1032_p1 = scmp.ne.s32.totalorder %s236_s29, %s1031_s6  ;;  %s1036_s13 = sshll.u32 %s1142_s11, 4  ;;  %s1037_s13 = int_to_ptr.vmem [resolvable:$false] %s1036_s13 }
  0x61   : > { %s1038_s9 = scalar_lea.vmem %s1037_s13, 256  ;;  %p1039_p4 = scmp.lt.s32.totalorder %s236_s29, %s1037_s13 }
  0x62   : > { %p1034_p2 = pnand %p1032_p1, %p988_p3  ;;  %p1040_p10 = scmp.lt.s32.totalorder %s1038_s9, %s1031_s6 }
  0x64   : > { %p1035_p7 = pneg %p1034_p2  ;;  %p1041_p8 = por %p1040_p10, %p1039_p4 }
  0x66   : > { %p1042_p11 = pnand %p1041_p8, %p1035_p7 }
  0x68   : > { %1045 = shalt.err (!%p1042_p11)
}
  0x69   : > { %891 = dma.hbm_to_vmem [thread:$0]  (!%p1291_p13), %s1298_s5, 128, %s236_s29, %s224_s30  }
  0x6a   : > { %p1578_p6 = scmp.ne.s32.totalorder %s1570_s25, 0 }
  0x6b   : > { %s1351_s10 = sand.u32 (!%p1578_p6), 1, %s1120_s16   ;;  %p1579_p3 = scmp.ne.s32.totalorder (!%p1578_p6), %s1568_s23, 0 }
  0x6c   : > { %244 = sbr.rel (%p1578_p6) target bundleno = 543 (0x21f), region = 36  ;;  %s827_s2 = sshll.u32 (!%p1578_p6), %s1351_s10, 3 }
  0x6d   : > { %s247_s12 = scalar_lea.sflag (!%p1578_p6), [#allocation3], %s1351_s10  ;;  %s250_s22 = scalar_lea.vmem (!%p1578_p6), [#allocation2], %s827_s2 }
  0x73   : > { %1099 = dma.done.wait (%p1579_p3), %s247_s12, 128  }
  0x74   : > { %1101 = vsyncadd (%p1579_p3), %s247_s12, 4294967168  ;;  %s255_s14 = sand.u32 1, %s1206_s21   ;;  %s1360_s25 = scalar_lea.vmem [#allocation5], %s827_s2 }
  0x75   : > { %s256_s5 = scalar_lea.sflag [#allocation6], %s255_s14 }
  0x76   : > { %1103 = dma.done.wait (%p1579_p3), %s256_s5, 128  }
  0x77   : > { %1105 = vsyncadd (%p1579_p3), %s256_s5, 4294967168  ;;  %p1580_p10 = scmp.eq.s32.totalorder %s1206_s21, 0 }
  0x79   : > { %1107 = dma.done.wait (%p1580_p10), [#allocation6], 640   ;;  %p1581_p13 = pmov %p1580_p10 }
  0x7a   : > { %v1143_v0 = vmov 0.0|0.0   ;;  %vm1144_vm0 = vmmov 0   ;;  %v1145_v1 = vmov 0.0   ;;  %vm308_vm1 = vcmask 277504   ;;  %v295_v2 = vld [vmem:[#allocation7] sm:$0xff]  ;;  %v296_v3 = vld [vmem:[#allocation7 + $0x8] sm:$0xff] }
  0x7b   : > { %1109 = vsyncadd (%p1581_p13), [#allocation6], 4294966656  ;;  %863 = vmatprep.subr.bf16.mxu0 %v1143_v0  ;;  %860 = vmatprep.mubr.msk.f32.mxu0 %vm1144_vm0, %v1145_v1  ;;  %v864_v4 = vpack.c.bf16 %v296_v3, %v295_v2  ;;  %v297_v5 = vld [vmem:[#allocation7 + $0x10] sm:$0xff]  ;;  %v298_v6 = vld [vmem:[#allocation7 + $0x18] sm:$0xff]  ;;  %v1146_v10 = vmov 1966171168   ;;  %v401_v12 = vlaneseq }
  0x7c   : > { %vm865_vm2 = vmpackc.low %vm308_vm1, %vm308_vm1  ;;  %v868_v7 = vpack.c.bf16 %v298_v6, %v297_v5  ;;  %v299_v8 = vld [vmem:[#allocation7 + $0x20] sm:$0x3]  ;;  %v399_v11 = vunpack.c.l.s4 %v1146_v10  ;;  %v1381_v23 = vld [vmem:[%s1360_s25] sm:$0xff]  ;;  %s830_s29 = sshll.u32 %s1351_s10, 6  ;;  %s843_s8 = sshll.u32 %s1128_s18, 10 }
  0x7d   : > { %866 = vmatpush3.bf16.xpose.msk.msra.mxu0 %vm865_vm2, %v864_v4  ;;  %v301_v9 = vld [vmem:[%s250_s22] sm:$0xff]  ;;  %v402_v14 = vshrl.u32 %v401_v12, 7  ;;  %s1459_s30 = scalar_lea.vmem [#allocation8], %s830_s29  ;;  %s1498_s6 = scalar_lea.hbm %s1559_s4, %s843_s8 }
  0x7e   : > { %867 = vmatprep.subr.bf16.mxu0 %v1143_v0  ;;  %v400_v13 = vunpack.c.0.s8 %v399_v11  ;;  %v397_v18 = vcombine.high %v301_v9, %v301_v9  ;;  %v831_v47 = vld [vmem:[%s1558_s3] ss:$0 sm:$0xff]  ;;  %s695_s27 = sshll.u32 %s1459_s30, 4  ;;  %s679_s18 = scalar_lea.sflag [#allocation4], %s1351_s10  ;;  %s1500_s27 = int_to_ptr.vmem [resolvable:$true] %s695_s27 }
  0x7f   : > { %v1375_v17 = vsub.s32 0, %v402_v14  ;;  %s1046_s11 = scalar_lea.vmem %s1500_s27, 1024  ;;  %p1582_p0 = scmp.ne.s32.totalorder %s1576_s28, 0 }
  0x80   : > { %v403_v15 = vsub.s32 %v400_v13, %v402_v14  ;;  %p1047_p12 = scmp.ne.s32.totalorder %s1500_s27, %s1046_s11  ;;  %s1147_s13 = smov [#allocation8]  }
  0x81   : > { %s1050_s9 = sshll.u32 %s1147_s13, 4  ;;  %s1051_s9 = int_to_ptr.vmem [resolvable:$false] %s1050_s9 }
  0x82   : > { %v404_v16 = vrot.slane %v301_v9, %v403_v15  ;;  %v411_v24 = vrot.slane %v397_v18, %v403_v15  ;;  %p1048_p5 = pnand %p1047_p12, %p1582_p0  ;;  %s1052_s2 = scalar_lea.vmem %s1051_s9, 2048 }
  0x83   : > { %p1053_p1 = scmp.lt.s32.totalorder %s1500_s27, %s1051_s9  ;;  %p1054_p2 = scmp.lt.s32.totalorder %s1052_s2, %s1046_s11 }
  0x84   : > { %v420_v19 = vrot.slane %v404_v16, %v403_v15  ;;  %v412_v20 = vcombine.high %v404_v16, %v404_v16  ;;  %v427_v35 = vrot.slane %v411_v24, %v403_v15  ;;  %v413_v36 = vcombine.high %v411_v24, %v411_v24  ;;  %p1049_p9 = pneg %p1048_p5 }
  0x85   : > { %870 = vmatpush3.bf16.xpose.msk.msra.mxu0 %vm865_vm2, %v868_v7  ;;  %p1055_p7 = por %p1054_p2, %p1053_p1 }
  0x86   : > { %858 = vmatprep.subr.mxu0 %v1145_v1  ;;  %v1378_v21 = vrot.slane %v420_v19, %v1375_v17  ;;  %v434_v22 = vrot.slane %v412_v20, %v403_v15  ;;  %v442_v27 = vcombine.high %v420_v19, %v420_v19  ;;  %v1404_v39 = vrot.slane %v427_v35, %v1375_v17 }
  0x87   : > { %v441_v40 = vrot.slane %v413_v36, %v403_v15  ;;  %p1056_p4 = pnand %p1055_p7, %p1049_p9 }
  0x88   : > { %v486_v25 = vmul.f32 %v1378_v21, %v1381_v23  ;;  %v1386_v26 = vrot.slane %v434_v22, %v1375_v17  ;;  %v1392_v30 = vrot.slane %v442_v27, %v1375_v17  ;;  %v444_v31 = vcombine.high %v434_v22, %v434_v22 }
  0x89   : > { %v490_v42 = vmul.f32 %v1404_v39, %v1381_v23  ;;  %v1410_v43 = vrot.slane %v441_v40, %v1375_v17  ;;  %v445_v18 = vcombine.high %v441_v40, %v441_v40 }
  0x8a   : > { %v494_v28 = vsel %vm308_vm1, %v486_v25, 0.0  ;;  %v487_v29 = vmul.f32 %v1386_v26, %v1381_v23  ;;  %v488_v33 = vmul.f32 %v1392_v30, %v1381_v23  ;;  %v1398_v34 = vrot.slane %v444_v31, %v1375_v17 }
  0x8b   : > { %495 = vadd.xlane.f32.xlu0 %v494_v28  ;;  %v506_v44 = vsel %vm308_vm1, %v490_v42, 0.0  ;;  %v491_v45 = vmul.f32 %v1410_v43, %v1381_v23  ;;  %v477_v28 = vrot.slane %v445_v18, %v1375_v17 }
  0x8c   : > { %v497_v32 = vsel %vm308_vm1, %v487_v29, 0.0  ;;  %v500_v37 = vsel %vm308_vm1, %v488_v33, 0.0  ;;  %v489_v38 = vmul.f32 %v1398_v34, %v1381_v23 }
  0x8d   : > { %859 = vmatpush3.xpose.msk.msra.mxu0 %vm308_vm1, %v299_v8  ;;  %498 = vadd.xlane.f32.xlu1 %v497_v32  ;;  %v509_v46 = vsel %vm308_vm1, %v491_v45, 0.0  ;;  %v443_v8 = vcombine.high %v427_v35, %v427_v35  ;;  %v493_v35 = vmul.f32 %v477_v28, %v1381_v23  ;;  %v649_v45 = vand.u32 127, %v401_v12 }
  0x8e   : > { %v503_v41 = vsel %vm308_vm1, %v489_v38, 0.0 }
  0x8f   : > { %501 = vadd.xlane.f32.xlu0 %v500_v37  ;;  %v473_v24 = vrot.slane %v443_v8, %v1375_v17  ;;  %vm651_vm3 = vcmp.eq.s32.totalorder %v649_v45, 1  ;;  %vm650_vm4 = vcmp.eq.s32.totalorder %v649_v45, 0 }
  0x90   : > { %861 = vmatmul.mubr.msk.f32.vlgmr.msra.gmra.mrb[0].mxu0 %vm308_vm1, %v301_v9 }
  0x91   : > { %504 = vadd.xlane.f32.xlu1 %v503_v41  ;;  %v492_v32 = vmul.f32 %v473_v24, %v1381_v23 }
  0x93   : > { %507 = vadd.xlane.f32.xlu0 %v506_v44  ;;  %v512_v37 = vsel %vm308_vm1, %v492_v32, 0.0 }
  0x95   : > { %510 = vadd.xlane.f32.xlu1 %v509_v46 }
 0x118   : > { %v496_v38 = vpop.xlane.xlu0 %495 }
 0x11a   : > { %v499_v40 = vpop.xlane.xlu1 %498 }
 0x11c   : > { %v502_v41 = vpop.xlane.xlu0 %501 }
 0x11e   : > { %v505_v42 = vpop.xlane.xlu1 %504 }
 0x120   : > { %v508_v44 = vpop.xlane.xlu0 %507 }
 0x122   : > { %v511_v46 = vpop.xlane.xlu1 %510 }
 0x163   : > { %v393_v48 = vpop.f32.mrb[0].mxu0 }
 0x164   : > { %v394_v49 = vadd.f32 %v831_v47, %v393_v48  ;;  %v862_v50 = vpop.f32.mrb[1].mxu0  ;;  %v640_v47 = vadd.f32 %v1378_v21, %v1381_v23  ;;  %v642_v48 = vadd.f32 %v1392_v30, %v1381_v23  ;;  %v643_v21 = vadd.f32 %v1398_v34, %v1381_v23 }
 0x165   : > { %v641_v50 = vadd.f32 %v1386_v26, %v1381_v23 }
 0x166   : > { %v519_v51 = vcombine.high %v394_v49, %v394_v49  ;;  %v526_v52 = vrot.slane %v394_v49, %v403_v15 }
 0x168   : > { %v533_v53 = vrot.slane %v519_v51, %v403_v15  ;;  %v534_v54 = vcombine.high %v526_v52, %v526_v52  ;;  %v542_v55 = vrot.slane %v526_v52, %v403_v15 }
 0x16a   : > { %v535_v56 = vcombine.high %v533_v53, %v533_v53  ;;  %v571_v57 = vrot.slane %v542_v55, %v1375_v17  ;;  %v564_v58 = vcombine.high %v542_v55, %v542_v55  ;;  %v556_v59 = vrot.slane %v534_v54, %v403_v15 }
 0x16b   : > { %v549_v60 = vrot.slane %v533_v53, %v403_v15  ;;  %v644_v55 = vadd.f32 %v1404_v39, %v1381_v23 }
 0x16c   : > { %v608_v61 = vmul.f32 %v571_v57, %v1381_v23  ;;  %v579_v62 = vrot.slane %v564_v58, %v1375_v17  ;;  %v575_v63 = vrot.slane %v556_v59, %v1375_v17  ;;  %v566_v0 = vcombine.high %v556_v59, %v556_v59 }
 0x16d   : > { %v587_v1 = vrot.slane %v549_v60, %v1375_v17  ;;  %v563_v2 = vrot.slane %v535_v56, %v403_v15  ;;  %v565_v3 = vcombine.high %v549_v60, %v549_v60  ;;  %v645_v58 = vadd.f32 %v1410_v43, %v1381_v23 }
 0x16e   : > { %v616_v4 = vsel %vm308_vm1, %v608_v61, 0.0  ;;  %v610_v5 = vmul.f32 %v579_v62, %v1381_v23  ;;  %v609_v6 = vmul.f32 %v575_v63, %v1381_v23  ;;  %v583_v7 = vrot.slane %v566_v0, %v1375_v17 }
 0x16f   : > { %617 = vadd.xlane.f32.xlu0 %v616_v4  ;;  %v591_v11 = vrot.slane %v563_v2, %v1375_v17  ;;  %v567_v13 = vcombine.high %v563_v2, %v563_v2  ;;  %v612_v15 = vmul.f32 %v587_v1, %v1381_v23  ;;  %v595_v16 = vrot.slane %v565_v3, %v1375_v17 }
 0x170   : > { %v622_v9 = vsel %vm308_vm1, %v610_v5, 0.0  ;;  %v611_v10 = vmul.f32 %v583_v7, %v1381_v23  ;;  %v619_v14 = vsel %vm308_vm1, %v609_v6, 0.0  ;;  %v646_v43 = vadd.f32 %v473_v24, %v1381_v23 }
 0x171   : > { %623 = vadd.xlane.f32.xlu1 %v622_v9  ;;  %v613_v20 = vmul.f32 %v591_v11, %v1381_v23  ;;  %v599_v22 = vrot.slane %v567_v13, %v1375_v17  ;;  %v628_v25 = vsel %vm308_vm1, %v612_v15, 0.0  ;;  %v614_v27 = vmul.f32 %v595_v16, %v1381_v23 }
 0x172   : > { %v625_v19 = vsel %vm308_vm1, %v611_v10, 0.0  ;;  %v515_v17 = vsel %vm308_vm1, %v493_v35, 0.0  ;;  %v647_v2 = vadd.f32 %v477_v28, %v1381_v23 }
 0x173   : > { %620 = vadd.xlane.f32.xlu0 %v619_v14  ;;  %v631_v29 = vsel %vm308_vm1, %v613_v20, 0.0  ;;  %v615_v31 = vmul.f32 %v599_v22, %v1381_v23  ;;  %v634_v33 = vsel %vm308_vm1, %v614_v27, 0.0 }
 0x175   : > { %626 = vadd.xlane.f32.xlu1 %v625_v19  ;;  %v637_v36 = vsel %vm308_vm1, %v615_v31, 0.0 }
 0x177   : > { %629 = vadd.xlane.f32.xlu0 %v628_v25 }
 0x179   : > { %632 = vadd.xlane.f32.xlu1 %v631_v29 }
 0x17b   : > { %635 = vadd.xlane.f32.xlu0 %v634_v33 }
 0x17d   : > { %638 = vadd.xlane.f32.xlu1 %v637_v36 }
 0x17f   : > { %513 = vadd.xlane.f32.xlu0 %v512_v37 }
 0x181   : > { %516 = vadd.xlane.f32.xlu1 %v515_v17 }
 0x1fc   : > { %v618_v49 = vpop.xlane.xlu0 %617 }
 0x1fd   : > { %v652_v51 = vsel %vm651_vm3, %v618_v49, %v640_v47 }
 0x1fe   : > { %v660_v52 = vsel %vm650_vm4, %v496_v38, %v652_v51  ;;  %v624_v53 = vpop.xlane.xlu1 %623 }
 0x1ff   : > { %670 = vst.msk [vmem:[%s1459_s30] sm:$0xff] %vm308_vm1, %v660_v52  ;;  %v654_v12 = vsel %vm651_vm3, %v624_v53, %v642_v48 }
 0x200   : > { %v662_v26 = vsel %vm650_vm4, %v502_v41, %v654_v12  ;;  %v621_v30 = vpop.xlane.xlu0 %620 }
 0x201   : > { %672 = vst.msk [vmem:[%s1459_s30 + $0x10] sm:$0xff] %vm308_vm1, %v662_v26  ;;  %v653_v54 = vsel %vm651_vm3, %v621_v30, %v641_v50 }
 0x202   : > { %v661_v56 = vsel %vm650_vm4, %v499_v40, %v653_v54  ;;  %v627_v57 = vpop.xlane.xlu1 %626 }
 0x203   : > { %671 = vst.msk [vmem:[%s1459_s30 + $0x8] sm:$0xff] %vm308_vm1, %v661_v56  ;;  %v655_v34 = vsel %vm651_vm3, %v627_v57, %v643_v21 }
 0x204   : > { %v663_v59 = vsel %vm650_vm4, %v505_v42, %v655_v34  ;;  %v630_v60 = vpop.xlane.xlu0 %629 }
 0x205   : > { %673 = vst.msk [vmem:[%s1459_s30 + $0x18] sm:$0xff] %vm308_vm1, %v663_v59  ;;  %v656_v39 = vsel %vm651_vm3, %v630_v60, %v644_v55 }
 0x206   : > { %v664_v61 = vsel %vm650_vm4, %v508_v44, %v656_v39  ;;  %v633_v62 = vpop.xlane.xlu1 %632 }
 0x207   : > { %674 = vst.msk [vmem:[%s1459_s30 + $0x20] sm:$0xff] %vm308_vm1, %v664_v61  ;;  %v657_v63 = vsel %vm651_vm3, %v633_v62, %v645_v58 }
 0x208   : > { %v665_v0 = vsel %vm650_vm4, %v511_v46, %v657_v63  ;;  %v636_v1 = vpop.xlane.xlu0 %635 }
 0x209   : > { %675 = vst.msk [vmem:[%s1459_s30 + $0x28] sm:$0xff] %vm308_vm1, %v665_v0  ;;  %v658_v4 = vsel %vm651_vm3, %v636_v1, %v646_v43 }
 0x20a   : > { %v639_v3 = vpop.xlane.xlu1 %638 }
 0x20b   : > { %v659_v23 = vsel %vm651_vm3, %v639_v3, %v647_v2 }
 0x20c   : > { %v514_v5 = vpop.xlane.xlu0 %513 }
 0x20d   : > { %v666_v6 = vsel %vm650_vm4, %v514_v5, %v658_v4 }
 0x20e   : > { %676 = vst.msk [vmem:[%s1459_s30 + $0x30] sm:$0xff] %vm308_vm1, %v666_v6  ;;  %v517_v7 = vpop.xlane.xlu1 %516 }
 0x20f   : > { %v667_v8 = vsel %vm650_vm4, %v517_v7, %v659_v23 }
 0x210   : > { %677 = vst.msk [vmem:[%s1459_s30 + $0x38] sm:$0xff] %vm308_vm1, %v667_v8 }
 0x211   : > { %1059 = shalt.err (!%p1056_p4)
}
 0x212   : > { %s1060_s12 = scalar_lea.hbm %s1498_s6, 1024  ;;  %s1064_s5 = scalar_lea.hbm %s1559_s4, 2048 }
 0x213   : > { %p1061_p8 = scmp.ne.s32.totalorder %s1498_s6, %s1060_s12  ;;  %p1065_p3 = scmp.lt.u32.totalorder %s1498_s6, %s1559_s4 }
 0x214   : > { %p1066_p10 = scmp.lt.u32.totalorder %s1064_s5, %s1060_s12  ;;  %p1068_p12 = scmp.lt.u32.totalorder %s1060_s12, %s1498_s6 }
 0x215   : > { %p1062_p11 = pnand %p1061_p8, %p1582_p0 }
 0x216   : > { %p1067_p13 = por %p1066_p10, %p1065_p3 }
 0x217   : > { %p1063_p6 = pneg %p1062_p11 }
 0x218   : > { %p1069_p5 = por %p1068_p12, %p1067_p13 }
 0x21a   : > { %p1070_p9 = pnand %p1069_p5, %p1063_p6 }
 0x21c   : > { %1073 = shalt.err (!%p1070_p9)
}
 0x21d   : > { %s1148_s23 = smov 128   ;;  %s1149_s29 = smov 8  }
 0x21e   : > { %879 = dma.vmem_to_hbm [thread:$0]  (%p1582_p0), %s1500_s27, 1024, %s1498_s6, %s679_s18, %s1148_s23, %s1148_s23, %s1149_s29  }
 0x21f PF: > { %s710_s30 = sand.u32 1, %s1116_s15   ;;  %p1583_p1 = scmp.ne.s32.totalorder %s1569_s24, 0 }
 0x220   : > { %p1584_p2 = scmp.ge.s32.totalorder %s1136_s20, 2  ;;  %s711_s8 = scalar_lea.sflag [#allocation4], %s710_s30 }
 0x222   : > { %p893_p7 = pnand %p1584_p2, %p1583_p1 }
 0x224   : > { %1111 = dma.done.wait (!%p893_p7), %s711_s8, 1024  }
 0x225   : > { %1113 = vsyncadd (!%p893_p7), %s711_s8, 4294966272  ;;  %s23_s20 = sadd.s32 1, %s1136_s20   ;;  %s1585_s18 = sld [smem:[#allocation13_spill]] }
 0x226   : > { %p20_p4 = scmp.ge.s32.totalorder %s23_s20, 4   ;;  %s1586_s19 = sld [smem:[#allocation14_spill]] }
 0x227   : > { %s1587_s15 = smov %s1120_s16  ;;  %s1588_s16 = smov %s1124_s17 }
 0x228   : > { %s1589_s17 = smov %s1278_s7  ;;  %22 = sbr.rel (!%p20_p4) target bundleno = 10 (0xa), region = 99 }
 0x22f   :  { %716 = vsyncpa [#allocation3], 1 }
 0x230   :  { %718 = vsyncpa [#allocation3 + $0x1], 1 }
 0x231   :  { %719 = vsyncpa [#allocation6], 1 }
 0x232   :  { %721 = vsyncpa [#allocation6 + $0x1], 1 }
 0x233   :  { %722 = vsyncpa [#allocation4], 1 }
 0x234   :  { %724 = vsyncpa [#allocation4 + $0x1], 1 }

</bundles_post_ra>
